<compile_context>
chip_gen: v6e
topology: v6e:2x2x1
jax: 0.10.0
libtpu: 0.0.40
codegen_flags: <defaults>
</compile_context>

<pallas_src>
import functools
import math

import jax
import jax.numpy as jnp
from jax.experimental import pallas as pl
from jax.experimental.pallas import tpu as pltpu

LANE = 128


def _bdot(a, b):
    """bf16 MXU matmul with f32 accumulation (used by kernel AND reference)."""
    return jnp.dot(a.astype(jnp.bfloat16), b.astype(jnp.bfloat16),
                   preferred_element_type=jnp.float32)


def _pack_rows(rows, width=LANE, n_rows=8):
    """Pack small 1-D vectors into one (8, 128) f32 tile (zero padded)."""
    out = jnp.zeros((n_rows, width), jnp.float32)
    for i, r in enumerate(rows):
        r = jnp.asarray(r, jnp.float32).reshape(-1)
        out = out.at[i, : r.shape[0]].set(r)
    return out


# ----------------------------------------------------------------------------
# Single fused kernel: encoder layer + mean-pool + MLP head per batch block.
# ----------------------------------------------------------------------------
def fused_kernel(x_ref,                 # (Bb, S, D)  f32   true-width activations
                 e_ref,                 # (Bb, 1, 128) f32  extra, broadcast on lanes
                 s32_ref,               # (4, D, 128) bf16  [wqkv | wo | w1 | w1m]
                 s64_ref,               # (3, K64, 128) bf16 [w2 | w2m | wout(pad 128)]
                 vec_ref,               # (8, 128) f32  ln1_g, ln1_b, b1, b2, ln2_g, ln2_b
                 mvec_ref,              # (8, 128) f32  w1e, mb1, mb2, bout(pad 128)
                 out_ref,               # (Bb, 1, 128) f32  lane-dense output
                 *, d, f, m):
    x3 = x_ref[...]                                   # (Bb, S, D) f32
    bblk, s_len, _ = x3.shape
    rows = bblk * s_len
    x = x3.reshape(rows, d)                           # stacked rows for 2-D MXU matmuls

    inv_d = 1.0 / d
    inv_s = 1.0 / s_len
    scale = 1.0 / math.sqrt(d)

    vec = vec_ref[...]
    ln1_g, ln1_b = vec[0:1, :d], vec[1:2, :d]
    b1, b2 = vec[2:3, :f], vec[3:4, :d]
    ln2_g, ln2_b = vec[4:5, :d], vec[5:6, :d]

    # --- fused QKV projection: one MXU push; q/k/v are static lane slices ---
    qkv = _bdot(x, s32_ref[0])                        # (rows, 128) f32
    q = qkv[:, 0:d].reshape(bblk, s_len, d)
    k = qkv[:, d:2 * d].reshape(bblk, s_len, d)
    v = qkv[:, 2 * d:3 * d].reshape(bblk, s_len, d)

    # --- single-head self-attention, un-normalised softmax through p@v ---
    s = jnp.einsum('bqd,bkd->bqk', q.astype(jnp.bfloat16), k.astype(jnp.bfloat16),
                   preferred_element_type=jnp.float32) * scale
    s = s - jnp.max(s, axis=-1, keepdims=True)
    p = jnp.exp(s)                                    # (Bb, S, S) un-normalised
    row_sum = jnp.sum(p, axis=-1, keepdims=True)
    attn = jnp.einsum('bqk,bkd->bqd', p.astype(jnp.bfloat16), v.astype(jnp.bfloat16),
                      preferred_element_type=jnp.float32)
    attn = attn * pl.reciprocal(row_sum, approx=True)  # EUP slot, not a VALU divide
    attn = _bdot(attn.reshape(rows, d), s32_ref[1][:, :d])   # output projection

    # --- residual + layernorm (true-width lanes, no masking needed) ---
    def ln(t, g, bias):
        mu = jnp.sum(t, axis=-1, keepdims=True) * inv_d
        tc = t - mu
        var = jnp.sum(tc * tc, axis=-1, keepdims=True) * inv_d
        return tc * jax.lax.rsqrt(var + 1e-5) * g + bias

    h = ln(x + attn, ln1_g, ln1_b)                    # (rows, D)

    # --- feed-forward ---
    ffn = jnp.maximum(_bdot(h, s32_ref[2][:, :f]) + b1, 0.0)      # (rows, F)
    ffn = _bdot(ffn, s64_ref[0][:f, :d]) + b2                     # (rows, D)
    o = ln(h + ffn, ln2_g, ln2_b)

    # --- fused epilogue: mean-pool over sequence (per batch element) ---
    pooled = jnp.sum(o.reshape(bblk, s_len, d), axis=1) * inv_s   # (Bb, D)

    # --- MLP head; concat([pooled, extra]) realised as split matmul ---
    mvec = mvec_ref[...]
    w1e, mb1 = mvec[0:1, :m], mvec[1:2, :m]
    mb2, bout = mvec[2:3, :m], mvec[3:4, :]
    e = e_ref[...][:, 0, :m]                          # (Bb, m), per-row scalar broadcast

    z = jnp.maximum(_bdot(pooled, s32_ref[3][:, :m]) + e * w1e + mb1, 0.0)
    z = jnp.maximum(_bdot(z, s64_ref[1][:m, :m]) + mb2, 0.0)
    # dropout is a no-op at inference
    out = _bdot(z, s64_ref[2][:m, :]) + bout          # (Bb, 128); real classes in [0:C)
    out_ref[...] = out[:, None, :]


def fused_forward(x, extra_b, kp, *, dims, bblk):
    B, S, D = x.shape
    _, F, M, _ = dims
    steps = B // bblk
    kern = functools.partial(fused_kernel, d=D, f=F, m=M)
    out = pl.pallas_call(
        kern,
        out_shape=jax.ShapeDtypeStruct((B, 1, LANE), jnp.float32),
        grid=(steps,),
        in_specs=[
            pl.BlockSpec((bblk, S, D), lambda i: (i, 0, 0)),        # activations
            pl.BlockSpec((bblk, 1, LANE), lambda i: (i, 0, 0)),     # extra
            pl.BlockSpec(kp["slab32"].shape, lambda i: (0, 0, 0)),  # weight slab (K=D)
            pl.BlockSpec(kp["slab64"].shape, lambda i: (0, 0, 0)),  # weight slab (K=F/M)
            pl.BlockSpec((8, LANE), lambda i: (0, 0)),              # packed enc vectors
            pl.BlockSpec((8, LANE), lambda i: (0, 0)),              # packed mlp vectors
        ],
        out_specs=pl.BlockSpec((bblk, 1, LANE), lambda i: (i, 0, 0)),
        compiler_params=pltpu.CompilerParams(
            dimension_semantics=("parallel",)),        # one step per TensorCore
    )(x, extra_b, kp["slab32"], kp["slab64"], kp["vec"], kp["mvec"])
    return out[:, 0, :]                                # (B, 128)


# ----------------------------------------------------------------------------
# Parameter init (true sizes), packed bf16 slabs for the kernel, forward.
# ----------------------------------------------------------------------------
def init_params(key, vocab, D, F, M, C):
    ks = jax.random.split(key, 12)
    s = lambda k, shp, fan: (jax.random.normal(k, shp, jnp.float32) / jnp.sqrt(fan))
    enc = dict(
        emb=s(ks[0], (vocab, D), D),
        wq=s(ks[1], (D, D), D), wk=s(ks[2], (D, D), D),
        wv=s(ks[3], (D, D), D), wo=s(ks[4], (D, D), D),
        ln1_g=jnp.ones((1, D), jnp.float32), ln1_b=jnp.zeros((1, D), jnp.float32),
        w1=s(ks[5], (D, F), D), b1=jnp.zeros((1, F), jnp.float32),
        w2=s(ks[6], (F, D), F), b2=jnp.zeros((1, D), jnp.float32),
        ln2_g=jnp.ones((1, D), jnp.float32), ln2_b=jnp.zeros((1, D), jnp.float32),
    )
    mlp = dict(
        w1m=s(ks[7], (D, M), D + 1), w1e=s(ks[8], (1, M), D + 1),
        b1=jnp.zeros((1, M), jnp.float32),
        w2=s(ks[9], (M, M), M), b2=jnp.zeros((1, M), jnp.float32),
        wout=s(ks[10], (M, C), M), bout=jnp.zeros((1, C), jnp.float32),
    )
    return enc, mlp


def pack_params(enc, mlp):
    """True-width bf16 weight slabs (lane dim padded to 128) + packed f32 vectors."""
    D = enc["wq"].shape[0]
    F = enc["w1"].shape[1]
    M = mlp["w2"].shape[0]
    C = mlp["wout"].shape[1]
    assert 3 * D <= LANE and F <= LANE and M <= LANE and C <= LANE, \
        "retile (reduction grid axis / flash KV axis) for large dims"

    def place(slab, i, w):
        return slab.at[i, : w.shape[0], : w.shape[1]].set(w.astype(jnp.bfloat16))

    wqkv = jnp.concatenate([enc["wq"], enc["wk"], enc["wv"]], axis=1)   # (D, 3D)
    slab32 = jnp.zeros((4, D, LANE), jnp.bfloat16)
    slab32 = place(slab32, 0, wqkv)
    slab32 = place(slab32, 1, enc["wo"])
    slab32 = place(slab32, 2, enc["w1"])
    slab32 = place(slab32, 3, mlp["w1m"])

    k64 = max(F, M)
    slab64 = jnp.zeros((3, k64, LANE), jnp.bfloat16)
    slab64 = place(slab64, 0, enc["w2"])
    slab64 = place(slab64, 1, mlp["w2"])
    slab64 = place(slab64, 2, mlp["wout"])               # lanes [0:C), rest zero

    vec = _pack_rows([enc["ln1_g"], enc["ln1_b"], enc["b1"], enc["b2"],
                      enc["ln2_g"], enc["ln2_b"]])
    mvec = _pack_rows([mlp["w1e"], mlp["b1"], mlp["b2"], mlp["bout"]])
    return dict(slab32=slab32, slab64=slab64, vec=vec, mvec=mvec)


def pick_batch_block(batch):
    """One grid step per TensorCore: 2 'parallel' steps on v7x, 1 on v5e/v6e."""
    kind = ""
    try:
        kind = jax.devices()[0].device_kind.lower()
    except Exception:
        pass
    n_tc = 2 if "v7" in kind else 1
    steps = max(1, min(batch, n_tc))
    while batch % steps:
        steps -= 1
    return batch // steps


@functools.partial(jax.jit, static_argnames=("dims", "bblk"))
def model_forward(tokens, extra, emb, kp, *, dims, bblk):
    D, F, M, C = dims
    x = jnp.take(emb, tokens, axis=0)                    # (B, S, D) f32 embedding glue
    B = x.shape[0]
    e_b = jnp.broadcast_to(extra.astype(jnp.float32)[:, None, None], (B, 1, LANE))
    out = fused_forward(x, e_b, kp, dims=dims, bblk=bblk)   # (B, 128)
    return out[:, :C]                                    # real classes


# ----------------------------------------------------------------------------
# Pure-JAX reference (same bf16-matmul / f32-everything-else math, unpadded).
# ----------------------------------------------------------------------------
def reference_forward(tokens, extra, enc, mlp):
    x = jnp.take(enc["emb"], tokens, axis=0)             # (B, S, D)
    D = x.shape[-1]
    S = x.shape[1]

    def ln(t, g, b):
        mu = t.sum(-1, keepdims=True) * (1.0 / D)
        tc = t - mu
        var = (tc * tc).sum(-1, keepdims=True) * (1.0 / D)
        return tc * jax.lax.rsqrt(var + 1e-5) * g + b

    def one(xs, e):
        q, k, v = _bdot(xs, enc["wq"]), _bdot(xs, enc["wk"]), _bdot(xs, enc["wv"])
        s = _bdot(q, k.T) * (1.0 / math.sqrt(D))
        s = s - s.max(-1, keepdims=True)
        p = jnp.exp(s)
        attn = _bdot(p, v) / p.sum(-1, keepdims=True)
        attn = _bdot(attn, enc["wo"])
        h = ln(xs + attn, enc["ln1_g"], enc["ln1_b"])
        f = jnp.maximum(_bdot(h, enc["w1"]) + enc["b1"], 0.0)
        f = _bdot(f, enc["w2"]) + enc["b2"]
        o = ln(h + f, enc["ln2_g"], enc["ln2_b"])
        pooled = o.sum(0, keepdims=True) * (1.0 / S)      # (1, D)
        z = jnp.maximum(_bdot(pooled, mlp["w1m"]) + e * mlp["w1e"] + mlp["b1"], 0.0)
        z = jnp.maximum(_bdot(z, mlp["w2"]) + mlp["b2"], 0.0)
        return (_bdot(z, mlp["wout"]) + mlp["bout"])[0]   # (C,)

    return jax.vmap(one)(x, extra)


if __name__ == "__main__":
    B, S, D, F, M, C, VOCAB = 2, 8, 32, 64, 64, 4, 33

    key = jax.random.PRNGKey(0)
    k_tok, k_extra, k_param = jax.random.split(key, 3)
    tokens = jax.random.randint(k_tok, (B, S), 0, VOCAB)
    extra = jax.random.normal(k_extra, (B,), jnp.float32)
    enc_params, mlp_params = init_params(k_param, VOCAB, D, F, M, C)
    kernel_params = pack_params(enc_params, mlp_params)

    bblk = pick_batch_block(B)                            # 1 on v7x (2 steps), 2 otherwise
    out = model_forward(tokens, extra, enc_params["emb"], kernel_params,
                        dims=(D, F, M, C), bblk=bblk)
    out = jax.block_until_ready(out)

    ref = reference_forward(tokens, extra, enc_params, mlp_params)
    assert out.shape == (B, C)
    # bf16 matmuls on both sides; approx reciprocal (EUP) only in the kernel -> 1e-2 tol.
    assert jnp.allclose(out, ref, atol=1e-2, rtol=1e-2), "mismatch vs reference"

    print("KERNEL_OK")
</pallas_src>

<mosaic_0001>
module attributes {stable_mosaic.version = 11 : i64} {
  func.func @fused_kernel(%arg0: i32, %arg1: memref<2x8x32xf32, #tpu.memory_space<vmem>>, %arg2: memref<2x1x128xf32, #tpu.memory_space<vmem>>, %arg3: memref<4x32x128xbf16, #tpu.memory_space<vmem>>, %arg4: memref<3x64x128xbf16, #tpu.memory_space<vmem>>, %arg5: memref<8x128xf32, #tpu.memory_space<vmem>>, %arg6: memref<8x128xf32, #tpu.memory_space<vmem>>, %arg7: memref<2x1x128xf32, #tpu.memory_space<vmem>>) attributes {dimension_semantics = [#tpu.dimension_semantics<parallel>], iteration_bounds = array<i64: 1>, scalar_prefetch = 0 : i64, scratch_operands = 0 : i64, tpu.core_type = #tpu.core_type<tc>, window_params = [{transform_indices = @transform_0, window_bounds = array<i64: 2, 8, 32>}, {transform_indices = @transform_1, window_bounds = array<i64: 2, 1, 128>}, {pipeline_mode = #tpu.pipeline_mode<synchronous>, transform_indices = @transform_2, window_bounds = array<i64: 4, 32, 128>}, {pipeline_mode = #tpu.pipeline_mode<synchronous>, transform_indices = @transform_3, window_bounds = array<i64: 3, 64, 128>}, {pipeline_mode = #tpu.pipeline_mode<synchronous>, transform_indices = @transform_4, window_bounds = array<i64: 8, 128>}, {pipeline_mode = #tpu.pipeline_mode<synchronous>, transform_indices = @transform_5, window_bounds = array<i64: 8, 128>}, {transform_indices = @transform_6, window_bounds = array<i64: 2, 1, 128>}]} {
    %c0 = arith.constant 0 : index
    %c0_0 = arith.constant 0 : index
    %c0_1 = arith.constant 0 : index
    %0 = vector.load %arg1[%c0, %c0_0, %c0_1] : memref<2x8x32xf32, #tpu.memory_space<vmem>>, vector<2x8x32xf32>
    %1 = vector.shape_cast %0 : vector<2x8x32xf32> to vector<16x32xf32>
    %c0_2 = arith.constant 0 : index
    %c0_3 = arith.constant 0 : index
    %2 = vector.load %arg5[%c0_2, %c0_3] : memref<8x128xf32, #tpu.memory_space<vmem>>, vector<8x128xf32>
    %3 = vector.extract_strided_slice %2 {offsets = [0, 0], sizes = [1, 32], strides = [1, 1]} : vector<8x128xf32> to vector<1x32xf32>
    %4 = vector.extract_strided_slice %2 {offsets = [1, 0], sizes = [1, 32], strides = [1, 1]} : vector<8x128xf32> to vector<1x32xf32>
    %5 = vector.extract_strided_slice %2 {offsets = [2, 0], sizes = [1, 64], strides = [1, 1]} : vector<8x128xf32> to vector<1x64xf32>
    %6 = vector.extract_strided_slice %2 {offsets = [3, 0], sizes = [1, 32], strides = [1, 1]} : vector<8x128xf32> to vector<1x32xf32>
    %7 = vector.extract_strided_slice %2 {offsets = [4, 0], sizes = [1, 32], strides = [1, 1]} : vector<8x128xf32> to vector<1x32xf32>
    %8 = vector.extract_strided_slice %2 {offsets = [5, 0], sizes = [1, 32], strides = [1, 1]} : vector<8x128xf32> to vector<1x32xf32>
    %c0_4 = arith.constant 0 : index
    %c0_5 = arith.constant 0 : index
    %c0_6 = arith.constant 0 : index
    %9 = vector.load %arg3[%c0_4, %c0_5, %c0_6] : memref<4x32x128xbf16, #tpu.memory_space<vmem>>, vector<1x32x128xbf16>
    %10 = vector.shape_cast %9 : vector<1x32x128xbf16> to vector<32x128xbf16>
    %11 = arith.truncf %1 : vector<16x32xf32> to vector<16x32xbf16>
    %cst = arith.constant dense<0.000000e+00> : vector<16x128xf32>
    %12 = tpu.matmul %11, %10, %cst {dimension_numbers = #tpu.dot_dimension_numbers<[1], [0], [0], [1], [0, 0, 1, 1], [], []>} : vector<16x32xbf16>, vector<32x128xbf16>, vector<16x128xf32> -> vector<16x128xf32>
    %13 = vector.extract_strided_slice %12 {offsets = [0, 0], sizes = [16, 32], strides = [1, 1]} : vector<16x128xf32> to vector<16x32xf32>
    %14 = vector.shape_cast %13 : vector<16x32xf32> to vector<2x8x32xf32>
    %15 = vector.extract_strided_slice %12 {offsets = [0, 32], sizes = [16, 32], strides = [1, 1]} : vector<16x128xf32> to vector<16x32xf32>
    %16 = vector.shape_cast %15 : vector<16x32xf32> to vector<2x8x32xf32>
    %17 = vector.extract_strided_slice %12 {offsets = [0, 64], sizes = [16, 32], strides = [1, 1]} : vector<16x128xf32> to vector<16x32xf32>
    %18 = vector.shape_cast %17 : vector<16x32xf32> to vector<2x8x32xf32>
    %19 = arith.truncf %14 : vector<2x8x32xf32> to vector<2x8x32xbf16>
    %20 = arith.truncf %16 : vector<2x8x32xf32> to vector<2x8x32xbf16>
    "tpu.trace_start"() <{level = 10 : i32, message = "bqd,bkd->bqk"}> : () -> ()
    %cst_7 = arith.constant dense<0.000000e+00> : vector<2x8x8xf32>
    %21 = tpu.matmul %19, %20, %cst_7 {dimension_numbers = #tpu.dot_dimension_numbers<[2], [2], [1], [1], [0, 0, 0, 1, 1, 1], [0], [0]>} : vector<2x8x32xbf16>, vector<2x8x32xbf16>, vector<2x8x8xf32> -> vector<2x8x8xf32>
    "tpu.trace_stop"() : () -> ()
    %cst_8 = arith.constant 0.176776692 : f32
    %22 = vector.broadcast %cst_8 : f32 to vector<2x8x8xf32>
    %23 = arith.mulf %21, %22 : vector<2x8x8xf32>
    %cst_9 = arith.constant dense<0xFF800000> : vector<2x8xf32>
    %24 = vector.multi_reduction <maximumf>, %23, %cst_9 [2] : vector<2x8x8xf32> to vector<2x8xf32>
    %25 = vector.shape_cast %24 : vector<2x8xf32> to vector<2x8x1xf32>
    %26 = vector.broadcast %25 : vector<2x8x1xf32> to vector<2x8x8xf32>
    %27 = arith.subf %23, %26 : vector<2x8x8xf32>
    %28 = math.exp %27 : vector<2x8x8xf32>
    %cst_10 = arith.constant dense<0.000000e+00> : vector<2x8xf32>
    %29 = vector.multi_reduction <add>, %28, %cst_10 [2] : vector<2x8x8xf32> to vector<2x8xf32>
    %30 = vector.shape_cast %29 : vector<2x8xf32> to vector<2x8x1xf32>
    %31 = arith.truncf %28 : vector<2x8x8xf32> to vector<2x8x8xbf16>
    %32 = arith.truncf %18 : vector<2x8x32xf32> to vector<2x8x32xbf16>
    "tpu.trace_start"() <{level = 10 : i32, message = "bqk,bkd->bqd"}> : () -> ()
    %cst_11 = arith.constant dense<0.000000e+00> : vector<2x8x32xf32>
    %33 = tpu.matmul %31, %32, %cst_11 {dimension_numbers = #tpu.dot_dimension_numbers<[2], [1], [1], [2], [0, 0, 0, 1, 1, 2], [0], [0]>} : vector<2x8x8xbf16>, vector<2x8x32xbf16>, vector<2x8x32xf32> -> vector<2x8x32xf32>
    "tpu.trace_stop"() : () -> ()
    %34 = tpu.reciprocal %30 {approx = true} : vector<2x8x1xf32> -> vector<2x8x1xf32>
    %35 = vector.broadcast %34 : vector<2x8x1xf32> to vector<2x8x32xf32>
    %36 = arith.mulf %33, %35 : vector<2x8x32xf32>
    %37 = vector.shape_cast %36 : vector<2x8x32xf32> to vector<16x32xf32>
    %c1 = arith.constant 1 : index
    %c0_12 = arith.constant 0 : index
    %c0_13 = arith.constant 0 : index
    %38 = vector.load %arg3[%c1, %c0_12, %c0_13] : memref<4x32x128xbf16, #tpu.memory_space<vmem>>, vector<1x32x128xbf16>
    %39 = vector.shape_cast %38 : vector<1x32x128xbf16> to vector<32x128xbf16>
    %40 = vector.extract_strided_slice %39 {offsets = [0, 0], sizes = [32, 32], strides = [1, 1]} : vector<32x128xbf16> to vector<32x32xbf16>
    %41 = arith.truncf %37 : vector<16x32xf32> to vector<16x32xbf16>
    %cst_14 = arith.constant dense<0.000000e+00> : vector<16x32xf32>
    %42 = tpu.matmul %41, %40, %cst_14 {dimension_numbers = #tpu.dot_dimension_numbers<[1], [0], [0], [1], [0, 0, 1, 1], [], []>} : vector<16x32xbf16>, vector<32x32xbf16>, vector<16x32xf32> -> vector<16x32xf32>
    %43 = arith.addf %1, %42 : vector<16x32xf32>
    %cst_15 = arith.constant dense<0.000000e+00> : vector<16xf32>
    %44 = vector.multi_reduction <add>, %43, %cst_15 [1] : vector<16x32xf32> to vector<16xf32>
    %45 = vector.shape_cast %44 : vector<16xf32> to vector<16x1xf32>
    %cst_16 = arith.constant 3.125000e-02 : f32
    %46 = vector.broadcast %cst_16 : f32 to vector<16x1xf32>
    %47 = arith.mulf %45, %46 : vector<16x1xf32>
    %48 = vector.broadcast %47 : vector<16x1xf32> to vector<16x32xf32>
    %49 = arith.subf %43, %48 : vector<16x32xf32>
    %50 = arith.mulf %49, %49 : vector<16x32xf32>
    %cst_17 = arith.constant dense<0.000000e+00> : vector<16xf32>
    %51 = vector.multi_reduction <add>, %50, %cst_17 [1] : vector<16x32xf32> to vector<16xf32>
    %52 = vector.shape_cast %51 : vector<16xf32> to vector<16x1xf32>
    %cst_18 = arith.constant 3.125000e-02 : f32
    %53 = vector.broadcast %cst_18 : f32 to vector<16x1xf32>
    %54 = arith.mulf %52, %53 : vector<16x1xf32>
    %cst_19 = arith.constant 9.99999974E-6 : f32
    %55 = vector.broadcast %cst_19 : f32 to vector<16x1xf32>
    %56 = arith.addf %54, %55 : vector<16x1xf32>
    %57 = math.rsqrt %56 : vector<16x1xf32>
    %58 = vector.broadcast %57 : vector<16x1xf32> to vector<16x32xf32>
    %59 = arith.mulf %49, %58 : vector<16x32xf32>
    %60 = vector.broadcast %3 : vector<1x32xf32> to vector<16x32xf32>
    %61 = arith.mulf %59, %60 : vector<16x32xf32>
    %62 = vector.broadcast %4 : vector<1x32xf32> to vector<16x32xf32>
    %63 = arith.addf %61, %62 : vector<16x32xf32>
    %c2 = arith.constant 2 : index
    %c0_20 = arith.constant 0 : index
    %c0_21 = arith.constant 0 : index
    %64 = vector.load %arg3[%c2, %c0_20, %c0_21] : memref<4x32x128xbf16, #tpu.memory_space<vmem>>, vector<1x32x128xbf16>
    %65 = vector.shape_cast %64 : vector<1x32x128xbf16> to vector<32x128xbf16>
    %66 = vector.extract_strided_slice %65 {offsets = [0, 0], sizes = [32, 64], strides = [1, 1]} : vector<32x128xbf16> to vector<32x64xbf16>
    %67 = arith.truncf %63 : vector<16x32xf32> to vector<16x32xbf16>
    %cst_22 = arith.constant dense<0.000000e+00> : vector<16x64xf32>
    %68 = tpu.matmul %67, %66, %cst_22 {dimension_numbers = #tpu.dot_dimension_numbers<[1], [0], [0], [1], [0, 0, 1, 1], [], []>} : vector<16x32xbf16>, vector<32x64xbf16>, vector<16x64xf32> -> vector<16x64xf32>
    %69 = vector.broadcast %5 : vector<1x64xf32> to vector<16x64xf32>
    %70 = arith.addf %68, %69 : vector<16x64xf32>
    %cst_23 = arith.constant 0.000000e+00 : f32
    %71 = vector.broadcast %cst_23 : f32 to vector<16x64xf32>
    %72 = arith.maximumf %70, %71 : vector<16x64xf32>
    %c0_24 = arith.constant 0 : index
    %c0_25 = arith.constant 0 : index
    %c0_26 = arith.constant 0 : index
    %73 = vector.load %arg4[%c0_24, %c0_25, %c0_26] : memref<3x64x128xbf16, #tpu.memory_space<vmem>>, vector<1x64x128xbf16>
    %74 = vector.shape_cast %73 : vector<1x64x128xbf16> to vector<64x128xbf16>
    %75 = vector.extract_strided_slice %74 {offsets = [0, 0], sizes = [64, 32], strides = [1, 1]} : vector<64x128xbf16> to vector<64x32xbf16>
    %76 = arith.truncf %72 : vector<16x64xf32> to vector<16x64xbf16>
    %cst_27 = arith.constant dense<0.000000e+00> : vector<16x32xf32>
    %77 = tpu.matmul %76, %75, %cst_27 {dimension_numbers = #tpu.dot_dimension_numbers<[1], [0], [0], [1], [0, 0, 1, 1], [], []>} : vector<16x64xbf16>, vector<64x32xbf16>, vector<16x32xf32> -> vector<16x32xf32>
    %78 = vector.broadcast %6 : vector<1x32xf32> to vector<16x32xf32>
    %79 = arith.addf %77, %78 : vector<16x32xf32>
    %80 = arith.addf %63, %79 : vector<16x32xf32>
    %cst_28 = arith.constant dense<0.000000e+00> : vector<16xf32>
    %81 = vector.multi_reduction <add>, %80, %cst_28 [1] : vector<16x32xf32> to vector<16xf32>
    %82 = vector.shape_cast %81 : vector<16xf32> to vector<16x1xf32>
    %cst_29 = arith.constant 3.125000e-02 : f32
    %83 = vector.broadcast %cst_29 : f32 to vector<16x1xf32>
    %84 = arith.mulf %82, %83 : vector<16x1xf32>
    %85 = vector.broadcast %84 : vector<16x1xf32> to vector<16x32xf32>
    %86 = arith.subf %80, %85 : vector<16x32xf32>
    %87 = arith.mulf %86, %86 : vector<16x32xf32>
    %cst_30 = arith.constant dense<0.000000e+00> : vector<16xf32>
    %88 = vector.multi_reduction <add>, %87, %cst_30 [1] : vector<16x32xf32> to vector<16xf32>
    %89 = vector.shape_cast %88 : vector<16xf32> to vector<16x1xf32>
    %cst_31 = arith.constant 3.125000e-02 : f32
    %90 = vector.broadcast %cst_31 : f32 to vector<16x1xf32>
    %91 = arith.mulf %89, %90 : vector<16x1xf32>
    %cst_32 = arith.constant 9.99999974E-6 : f32
    %92 = vector.broadcast %cst_32 : f32 to vector<16x1xf32>
    %93 = arith.addf %91, %92 : vector<16x1xf32>
    %94 = math.rsqrt %93 : vector<16x1xf32>
    %95 = vector.broadcast %94 : vector<16x1xf32> to vector<16x32xf32>
    %96 = arith.mulf %86, %95 : vector<16x32xf32>
    %97 = vector.broadcast %7 : vector<1x32xf32> to vector<16x32xf32>
    %98 = arith.mulf %96, %97 : vector<16x32xf32>
    %99 = vector.broadcast %8 : vector<1x32xf32> to vector<16x32xf32>
    %100 = arith.addf %98, %99 : vector<16x32xf32>
    %101 = vector.shape_cast %100 : vector<16x32xf32> to vector<2x8x32xf32>
    %cst_33 = arith.constant dense<0.000000e+00> : vector<2x32xf32>
    %102 = vector.multi_reduction <add>, %101, %cst_33 [1] : vector<2x8x32xf32> to vector<2x32xf32>
    %cst_34 = arith.constant 1.250000e-01 : f32
    %103 = vector.broadcast %cst_34 : f32 to vector<2x32xf32>
    %104 = arith.mulf %102, %103 : vector<2x32xf32>
    %c0_35 = arith.constant 0 : index
    %c0_36 = arith.constant 0 : index
    %105 = vector.load %arg6[%c0_35, %c0_36] : memref<8x128xf32, #tpu.memory_space<vmem>>, vector<8x128xf32>
    %106 = vector.extract_strided_slice %105 {offsets = [0, 0], sizes = [1, 64], strides = [1, 1]} : vector<8x128xf32> to vector<1x64xf32>
    %107 = vector.extract_strided_slice %105 {offsets = [1, 0], sizes = [1, 64], strides = [1, 1]} : vector<8x128xf32> to vector<1x64xf32>
    %108 = vector.extract_strided_slice %105 {offsets = [2, 0], sizes = [1, 64], strides = [1, 1]} : vector<8x128xf32> to vector<1x64xf32>
    %109 = vector.extract_strided_slice %105 {offsets = [3, 0], sizes = [1, 128], strides = [1, 1]} : vector<8x128xf32> to vector<1x128xf32>
    %c0_37 = arith.constant 0 : index
    %c0_38 = arith.constant 0 : index
    %c0_39 = arith.constant 0 : index
    %110 = vector.load %arg2[%c0_37, %c0_38, %c0_39] : memref<2x1x128xf32, #tpu.memory_space<vmem>>, vector<2x1x128xf32>
    %111 = vector.extract_strided_slice %110 {offsets = [0, 0, 0], sizes = [2, 1, 64], strides = [1, 1, 1]} : vector<2x1x128xf32> to vector<2x1x64xf32>
    %112 = vector.shape_cast %111 : vector<2x1x64xf32> to vector<2x64xf32>
    %c3 = arith.constant 3 : index
    %c0_40 = arith.constant 0 : index
    %c0_41 = arith.constant 0 : index
    %113 = vector.load %arg3[%c3, %c0_40, %c0_41] : memref<4x32x128xbf16, #tpu.memory_space<vmem>>, vector<1x32x128xbf16>
    %114 = vector.shape_cast %113 : vector<1x32x128xbf16> to vector<32x128xbf16>
    %115 = vector.extract_strided_slice %114 {offsets = [0, 0], sizes = [32, 64], strides = [1, 1]} : vector<32x128xbf16> to vector<32x64xbf16>
    %116 = arith.truncf %104 : vector<2x32xf32> to vector<2x32xbf16>
    %cst_42 = arith.constant dense<0.000000e+00> : vector<2x64xf32>
    %117 = tpu.matmul %116, %115, %cst_42 {dimension_numbers = #tpu.dot_dimension_numbers<[1], [0], [0], [1], [0, 0, 1, 1], [], []>} : vector<2x32xbf16>, vector<32x64xbf16>, vector<2x64xf32> -> vector<2x64xf32>
    %118 = vector.broadcast %106 : vector<1x64xf32> to vector<2x64xf32>
    %119 = arith.mulf %112, %118 : vector<2x64xf32>
    %120 = arith.addf %117, %119 : vector<2x64xf32>
    %121 = vector.broadcast %107 : vector<1x64xf32> to vector<2x64xf32>
    %122 = arith.addf %120, %121 : vector<2x64xf32>
    %cst_43 = arith.constant 0.000000e+00 : f32
    %123 = vector.broadcast %cst_43 : f32 to vector<2x64xf32>
    %124 = arith.maximumf %122, %123 : vector<2x64xf32>
    %c1_44 = arith.constant 1 : index
    %c0_45 = arith.constant 0 : index
    %c0_46 = arith.constant 0 : index
    %125 = vector.load %arg4[%c1_44, %c0_45, %c0_46] : memref<3x64x128xbf16, #tpu.memory_space<vmem>>, vector<1x64x128xbf16>
    %126 = vector.shape_cast %125 : vector<1x64x128xbf16> to vector<64x128xbf16>
    %127 = vector.extract_strided_slice %126 {offsets = [0, 0], sizes = [64, 64], strides = [1, 1]} : vector<64x128xbf16> to vector<64x64xbf16>
    %128 = arith.truncf %124 : vector<2x64xf32> to vector<2x64xbf16>
    %cst_47 = arith.constant dense<0.000000e+00> : vector<2x64xf32>
    %129 = tpu.matmul %128, %127, %cst_47 {dimension_numbers = #tpu.dot_dimension_numbers<[1], [0], [0], [1], [0, 0, 1, 1], [], []>} : vector<2x64xbf16>, vector<64x64xbf16>, vector<2x64xf32> -> vector<2x64xf32>
    %130 = vector.broadcast %108 : vector<1x64xf32> to vector<2x64xf32>
    %131 = arith.addf %129, %130 : vector<2x64xf32>
    %cst_48 = arith.constant 0.000000e+00 : f32
    %132 = vector.broadcast %cst_48 : f32 to vector<2x64xf32>
    %133 = arith.maximumf %131, %132 : vector<2x64xf32>
    %c2_49 = arith.constant 2 : index
    %c0_50 = arith.constant 0 : index
    %c0_51 = arith.constant 0 : index
    %134 = vector.load %arg4[%c2_49, %c0_50, %c0_51] : memref<3x64x128xbf16, #tpu.memory_space<vmem>>, vector<1x64x128xbf16>
    %135 = vector.shape_cast %134 : vector<1x64x128xbf16> to vector<64x128xbf16>
    %136 = arith.truncf %133 : vector<2x64xf32> to vector<2x64xbf16>
    %cst_52 = arith.constant dense<0.000000e+00> : vector<2x128xf32>
    %137 = tpu.matmul %136, %135, %cst_52 {dimension_numbers = #tpu.dot_dimension_numbers<[1], [0], [0], [1], [0, 0, 1, 1], [], []>} : vector<2x64xbf16>, vector<64x128xbf16>, vector<2x128xf32> -> vector<2x128xf32>
    %138 = vector.broadcast %109 : vector<1x128xf32> to vector<2x128xf32>
    %139 = arith.addf %137, %138 : vector<2x128xf32>
    %140 = vector.shape_cast %139 : vector<2x128xf32> to vector<2x1x128xf32>
    %c0_53 = arith.constant 0 : index
    %c0_54 = arith.constant 0 : index
    %c0_55 = arith.constant 0 : index
    %141 = vector.load %arg7[%c0_53, %c0_54, %c0_55] : memref<2x1x128xf32, #tpu.memory_space<vmem>>, vector<2x1x128xf32>
    tpu.vector_store %arg7[%c0_53, %c0_54, %c0_55], %140 {strides = array<i32>} : memref<2x1x128xf32, #tpu.memory_space<vmem>>, vector<2x1x128xf32>,
    return
  }
  func.func @transform_0(%arg0: i32) -> (i32, i32, i32) {
    %c0_i32 = arith.constant 0 : i32
    %c0_i32_0 = arith.constant 0 : i32
    %c0_i32_1 = arith.constant 0 : i32
    return %arg0, %c0_i32, %c0_i32_0 : i32, i32, i32
  }
  func.func @transform_1(%arg0: i32) -> (i32, i32, i32) {
    %c0_i32 = arith.constant 0 : i32
    %c0_i32_0 = arith.constant 0 : i32
    %c0_i32_1 = arith.constant 0 : i32
    return %arg0, %c0_i32, %c0_i32_0 : i32, i32, i32
  }
  func.func @transform_2(%arg0: i32) -> (i32, i32, i32) {
    %c0_i32 = arith.constant 0 : i32
    %c0_i32_0 = arith.constant 0 : i32
    %c0_i32_1 = arith.constant 0 : i32
    %c0_i32_2 = arith.constant 0 : i32
    return %c0_i32, %c0_i32_0, %c0_i32_1 : i32, i32, i32
  }
  func.func @transform_3(%arg0: i32) -> (i32, i32, i32) {
    %c0_i32 = arith.constant 0 : i32
    %c0_i32_0 = arith.constant 0 : i32
    %c0_i32_1 = arith.constant 0 : i32
    %c0_i32_2 = arith.constant 0 : i32
    return %c0_i32, %c0_i32_0, %c0_i32_1 : i32, i32, i32
  }
  func.func @transform_4(%arg0: i32) -> (i32, i32) {
    %c0_i32 = arith.constant 0 : i32
    %c0_i32_0 = arith.constant 0 : i32
    %c0_i32_1 = arith.constant 0 : i32
    return %c0_i32, %c0_i32_0 : i32, i32
  }
  func.func @transform_5(%arg0: i32) -> (i32, i32) {
    %c0_i32 = arith.constant 0 : i32
    %c0_i32_0 = arith.constant 0 : i32
    %c0_i32_1 = arith.constant 0 : i32
    return %c0_i32, %c0_i32_0 : i32, i32
  }
  func.func @transform_6(%arg0: i32) -> (i32, i32, i32) {
    %c0_i32 = arith.constant 0 : i32
    %c0_i32_0 = arith.constant 0 : i32
    %c0_i32_1 = arith.constant 0 : i32
    return %arg0, %c0_i32, %c0_i32_0 : i32, i32, i32
  }
}

</mosaic_0001>

<bundles_post_ra>
// kernel: model_forward.1
= control target key start
LH: loop header
LB: loop body
LE: loop exit
PB: predicated region body
PF: predicated region fallthrough
CT: control target
= control target key end

     0   :  { %v1209_v1 = vmov 0.0   ;;  %vm1210_vm0 = vmmov 0   ;;  %vm45_vm1 = vcmask 261120   ;;  %s1451_s0 = inlined_call_operand.vmem [shape: f32[2,8,32], index: 0, kind: input, shape index: {}]   ;;  %s1452_s1 = inlined_call_operand.vmem [shape: f32[2,1,128], index: 1, kind: input, shape index: {}]   ;;  %s1453_s2 = inlined_call_operand.vmem [shape: bf16[4,32,128], index: 2, kind: input, shape index: {}]   ;;  %s1454_s3 = inlined_call_operand.vmem [shape: bf16[3,64,128], index: 3, kind: input, shape index: {}]   ;;  %s1455_s4 = inlined_call_operand.vmem [shape: f32[8,128], index: 4, kind: input, shape index: {}]   ;;  %s1456_s5 = inlined_call_operand.vmem [shape: f32[8,128], index: 5, kind: input, shape index: {}]   ;;  %s1457_s6 = inlined_call_operand.hbm [shape: f32[2,1,128], index: 6, kind: output, shape index: {}]  }
   0x1   :  { %v1151_v0 = vld [vmem:[%s1453_s2 + $0x8] sm:$0xff]   ;;  %1051 = vmatprep.subr.bf16.mxu0 %v1209_v1  ;;  %v1152_v2 = vld [vmem:[%s1453_s2] sm:$0xff]   ;;  %1059 = vmatprep.subr.bf16.mxu1 %v1209_v1 }
   0x2   :  { %1052 = vmatpush3.bf16.msra.mxu0 %v1151_v0  ;;  %1055 = vmatprep.mubr.msk.bf16.mxu0 %vm1210_vm0, %v1209_v1  ;;  %v1265_v3 = vld [vmem:[%s1451_s0] sm:$0xff]  ;;  %v1270_v4 = vld [vmem:[%s1451_s0 + $0x8] sm:$0xff] }
   0x3   :  { %1053 = vmatprep.subr.bf16.mxu0 %v1209_v1  ;;  %1061 = vmatprep.mubr.msk.bf16.mxu1 %vm1210_vm0, %v1209_v1  ;;  %v32_v5 = vpack.c.bf16 %v1270_v4, %v1265_v3 }
   0x6   :  { %1054 = vmatpush3.bf16.msra.mxu0 %v1152_v2 }
   0x7   :  { %1065 = vmatprep.subr.bf16.mxu0 %v1209_v1 }
   0x9   :  { %1056 = vmatmul.mubr.msk.bf16.vlgmr.msra.gmra.mxu0 %vm45_vm1, %v32_v5 }
   0xa   :  { %1067 = vmatprep.mubr.msk.bf16.mxu0 %vm1210_vm0, %v1209_v1 }
   0xb   :  { %11 = vsyncpa [#allocation3], 0  ;;  %s1211_s0 = smov 96   ;;  %s1212_s29 = smov 64   ;;  %vm218_vm2 = vcmask 1043456   ;;  %vm192_vm3 = vcmask 64512  }
   0xc   :  { %v1153_v44 = vld [vmem:[%s1453_s2 + $0x18] sm:$0xff]   ;;  %v1154_v45 = vld [vmem:[%s1453_s2 + $0x10] sm:$0xff]   ;;  %vm521_vm4 = vcmask 523264   ;;  %vm667_vm5 = vcmask 1041409   ;;  %s1214_s20 = smov [#allocation2]  }
  0xc9   :  { %v83_v6 = vpop.f32.mrf.mxu0 }
  0xca   :  { %v90_v7 = vpack.c.bf16 %v83_v6, %v83_v6 }
  0xcb   :  { %v1057_v8 = vpop.f32.mrf.mxu0 }
  0xcc   :  { %93 = vrot.lane.b32.xlu0 %v90_v7, %s1211_s0 }
  0xcd   :  { %v86_v9 = vpop.f32.mrf.mxu0 }
  0xce   :  { %v91_v10 = vpack.c.bf16 %v86_v9, %v86_v9 }
  0xcf   :  { %v1058_v11 = vpop.f32.mrf.mxu0 }
  0xd0   :  { %142 = vrot.lane.b32.xlu0 %v91_v10, %s1211_s0 }
  0xd4   :  { %213 = vrot.lane.b32.xlu0 %v90_v7, %s1212_s29 }
 0x13e   :  { %v94_v12 = vpop.permute.xlu0 %93 }
 0x13f   :  { %v99_v13 = vsel %vm45_vm1, %v94_v12, 0 }
 0x140   :  { %1060 = vmatpush3.bf16.xpose.msra.mxu1 %v99_v13 }
 0x141   :  { %1071 = vmatprep.subr.bf16.mxu1 %v1209_v1 }
 0x142   :  { %v143_v14 = vpop.permute.xlu0 %142 }
 0x143   :  { %v148_v15 = vsel %vm45_vm1, %v143_v14, 0 }
 0x144   :  { %1066 = vmatpush3.bf16.xpose.msra.mxu0 %v148_v15 }
 0x145   :  { %1077 = vmatprep.subr.bf16.mxu0 %v1209_v1 }
 0x146   :  { %v214_v16 = vpop.permute.xlu0 %213 }
 0x147   :  { %v220_v17 = vsel %vm218_vm2, %v214_v16, 0  ;;  %1062 = vmatmul.mubr.msk.bf16.vlgmr.msra.gmra.mxu1 %vm45_vm1, %v90_v7 }
 0x148   :  { %1072 = vmatpush3.bf16.msra.mxu1 %v220_v17  ;;  %1073 = vmatprep.mubr.msk.bf16.mxu1 %vm1210_vm0, %v1209_v1  ;;  %v1156_v17 = vld [vmem:[%s1453_s2 + $0x20] sm:$0xff]  }
 0x149   :  { %1083 = vmatprep.subr.bf16.mxu1 %v1209_v1 }
 0x14b   :  { %1068 = vmatmul.mubr.msk.bf16.vlgmr.msra.gmra.mxu0 %vm45_vm1, %v91_v10 }
 0x14c   :  { %1079 = vmatprep.mubr.msk.bf16.mxu0 %vm1210_vm0, %v1209_v1 }
 0x207   :  { %v135_v18 = vpop.f32.mrf.mxu1 }
 0x208   :  { %v190_v19 = vmul.f32 0.17677669, %v135_v18  ;;  %v1157_v18 = vld [vmem:[%s1454_s3 + $0x18] sm:$0xff]  }
 0x209   :  { %v1063_v20 = vpop.f32.mrf.mxu1 }
 0x20a   :  { %v193_v21 = vsel %vm192_vm3, %v190_v19, -inf }
 0x20b   :  { %194 = vmax.xlane.f32.xlu1 %v193_v21  ;;  %v138_v22 = vpop.f32.mrf.mxu1  ;;  %v184_v23 = vpop.f32.mrf.mxu0 }
 0x20c   :  { %v191_v24 = vmul.f32 0.17677669, %v184_v23 }
 0x20d   :  { %v1064_v25 = vpop.f32.mrf.mxu1  ;;  %v1069_v26 = vpop.f32.mrf.mxu0 }
 0x20e   :  { %v196_v27 = vsel %vm192_vm3, %v191_v24, -inf  ;;  %v404_v25 = vlaneseq }
 0x20f   :  { %197 = vmax.xlane.f32.xlu1 %v196_v27  ;;  %v187_v28 = vpop.f32.mrf.mxu0 }
 0x210   :  { %v1336_v26 = vshrl.u32 %v404_v25, 7  ;;  %v1342_v28 = vld [vmem:[%s1455_s4] sm:$0xff] }
 0x211   :  { %v1070_v29 = vpop.f32.mrf.mxu0 }
 0x212   :  { %v406_v27 = vsub.s32 0, %v1336_v26 }
 0x220   :  { %262 = vrot.lane.b32.xlu1 %v91_v10, %s1212_s29 }
 0x294   :  { %v195_v30 = vpop.xlane.xlu1 %194 }
 0x295   :  { %v199_v31 = vsub.f32 %v190_v19, %v195_v30 }
 0x297   :  { %v201_v32 = vmul.f32 1.442695, %v199_v31  ;;  %v407_v31 = vrot.slane %v1342_v28, %v406_v27 }
 0x298   :  { %v198_v33 = vpop.xlane.xlu1 %197 }
 0x299   :  { %1171 = vpow2.f32 %v201_v32  ;;  %v200_v34 = vsub.f32 %v191_v24, %v198_v33  ;;  %v412_v32 = vsub.s32 1, %v1336_v26 }
 0x29b   :  { %v203_v35 = vmul.f32 1.442695, %v200_v34 }
 0x29c   :  { %v263_v36 = vpop.permute.xlu1 %262 }
 0x29d   :  { %1173 = vpow2.f32 %v203_v35  ;;  %v268_v37 = vsel %vm218_vm2, %v263_v36, 0  ;;  %v413_v36 = vrot.slane %v1342_v28, %v412_v32 }
 0x29e   :  { %1078 = vmatpush3.bf16.msra.mxu0 %v268_v37 }
 0x29f   :  { %1091 = vmatprep.subr.bf16.mxu0 %v1209_v1 }
 0x2a6   :  { %v1172_v38 = vpop.eup %1171 }
 0x2a7   :  { %v205_v39 = vsel %vm192_vm3, %v1172_v38, 0.0  ;;  %v211_v40 = vpack.c.bf16 %v1172_v38, %v1172_v38 }
 0x2a8   :  { %206 = vadd.xlane.f32.xlu0 %v205_v39 }
 0x2a9   :  { %1074 = vmatmul.mubr.msk.bf16.vlgmr.msra.gmra.mxu1 %vm192_vm3, %v211_v40 }
 0x2aa   :  { %v1174_v41 = vpop.eup %1173  ;;  %1087 = vmatprep.mubr.msk.bf16.mxu1 %vm1210_vm0, %v1209_v1  ;;  %1084 = vmatpush3.bf16.msra.mxu1 %v1153_v44  ;;  %v424_v44 = vsub.s32 2, %v1336_v26 }
 0x2ab   :  { %v208_v42 = vsel %vm192_vm3, %v1174_v41, 0.0  ;;  %v212_v43 = vpack.c.bf16 %v1174_v41, %v1174_v41  ;;  %1085 = vmatprep.subr.bf16.mxu1 %v1209_v1  ;;  %v1158_v41 = vld [vmem:[%s1454_s3 + $0x10] sm:$0xff]  }
 0x2ac   :  { %209 = vadd.xlane.f32.xlu1 %v208_v42  ;;  %v1159_v42 = vld [vmem:[%s1454_s3 + $0x8] sm:$0xff]  }
 0x2ad   :  { %1080 = vmatmul.mubr.msk.bf16.vlgmr.msra.gmra.mxu0 %vm192_vm3, %v212_v43  ;;  %v1160_v43 = vld [vmem:[%s1454_s3] sm:$0xff]  }
 0x2ae   :  { %1095 = vmatprep.mubr.msk.bf16.mxu0 %vm1210_vm0, %v1209_v1  ;;  %1086 = vmatpush3.bf16.msra.mxu1 %v1154_v45  ;;  %v425_v45 = vrot.slane %v1342_v28, %v424_v44 }
 0x2af   :  { %1099 = vmatprep.subr.bf16.mxu1 %v1209_v1 }
 0x331   :  { %v207_v46 = vpop.xlane.xlu0 %206 }
 0x332   :  { %1175 = vrcp.f32 %v207_v46 }
 0x335   :  { %v210_v47 = vpop.xlane.xlu1 %209 }
 0x336   :  { %1177 = vrcp.f32 %v210_v47 }
 0x33f   :  { %v1176_v50 = vpop.eup %1175 }
 0x343   :  { %v1178_v51 = vpop.eup %1177 }
 0x369   :  { %v256_v48 = vpop.f32.mrf.mxu1 }
 0x36a   :  { %v312_v54 = vmul.f32 %v1176_v50, %v256_v48 }
 0x36b   :  { %v1075_v49 = vpop.f32.mrf.mxu1 }
 0x36d   :  { %v259_v52 = vpop.f32.mrf.mxu1  ;;  %v304_v53 = vpop.f32.mrf.mxu0 }
 0x36e   :  { %v313_v55 = vmul.f32 %v1178_v51, %v304_v53 }
 0x36f   :  { %v1076_v56 = vpop.f32.mrf.mxu1  ;;  %v1081_v57 = vpop.f32.mrf.mxu0 }
 0x370   :  { %v319_v58 = vpack.c.bf16 %v313_v55, %v312_v54  ;;  %v495_v55 = vsub.s32 3, %v1336_v26 }
 0x371   :  { %v307_v59 = vpop.f32.mrf.mxu0 }
 0x372   :  { %1088 = vmatmul.mubr.msk.bf16.vlgmr.msra.gmra.mxu1 %vm45_vm1, %v319_v58  ;;  %v496_v56 = vrot.slane %v1342_v28, %v495_v55 }
 0x373   :  { %v1082_v60 = vpop.f32.mrf.mxu0  ;;  %1107 = vmatprep.mubr.msk.bf16.mxu1 %vm1210_vm0, %v1209_v1  ;;  %1100 = vmatpush3.bf16.msra.mxu1 %v1157_v18 }
 0x374   :  { %1101 = vmatprep.subr.bf16.mxu1 %v1209_v1 }
 0x377   :  { %1102 = vmatpush3.bf16.msra.mxu1 %v1158_v41 }
 0x378   :  { %1103 = vmatprep.subr.bf16.mxu1 %v1209_v1 }
 0x37b   :  { %1104 = vmatpush3.bf16.msra.mxu1 %v1159_v42 }
 0x37c   :  { %1105 = vmatprep.subr.bf16.mxu1 %v1209_v1 }
 0x37f   :  { %1106 = vmatpush3.bf16.msra.mxu1 %v1160_v43 }
 0x380   :  { %1131 = vmatprep.subr.bf16.mxu1 %v1209_v1 }
 0x432   :  { %v369_v61 = vpop.f32.mrf.mxu1 }
 0x433   :  { %v376_v62 = vadd.f32 %v369_v61, %v1265_v3 }
 0x434   :  { %v1089_v63 = vpop.f32.mrf.mxu1 }
 0x435   :  { %v378_v0 = vsel %vm45_vm1, %v376_v62, 0.0 }
 0x436   :  { %379 = vadd.xlane.f32.xlu0 %v378_v0  ;;  %v372_v2 = vpop.f32.mrf.mxu1 }
 0x437   :  { %v377_v5 = vadd.f32 %v372_v2, %v1270_v4  ;;  %v1155_v4 = vld [vmem:[%s1453_s2 + $0x28] sm:$0xff]  }
 0x438   :  { %v1090_v6 = vpop.f32.mrf.mxu1  ;;  %1092 = vmatpush3.bf16.msra.mxu0 %v1155_v4 }
 0x439   :  { %v381_v7 = vsel %vm45_vm1, %v377_v5, 0.0  ;;  %1093 = vmatprep.subr.bf16.mxu0 %v1209_v1 }
 0x43a   :  { %382 = vadd.xlane.f32.xlu0 %v381_v7 }
 0x43c   :  { %1094 = vmatpush3.bf16.msra.mxu0 %v1156_v17 }
 0x43d   :  { %1111 = vmatprep.subr.bf16.mxu0 %v1209_v1 }
 0x4bf   :  { %v380_v8 = vpop.xlane.xlu0 %379 }
 0x4c0   :  { %v384_v9 = vmul.f32 0.03125, %v380_v8 }
 0x4c2   :  { %v386_v10 = vsub.f32 %v376_v62, %v384_v9 }
 0x4c3   :  { %v383_v11 = vpop.xlane.xlu0 %382 }
 0x4c4   :  { %v385_v12 = vmul.f32 0.03125, %v383_v11  ;;  %v388_v13 = vmul.f32 %v386_v10, %v386_v10 }
 0x4c6   :  { %v387_v14 = vsub.f32 %v377_v5, %v385_v12  ;;  %v390_v3 = vsel %vm45_vm1, %v388_v13, 0.0 }
 0x4c7   :  { %391 = vadd.xlane.f32.xlu0 %v390_v3 }
 0x4c8   :  { %v389_v15 = vmul.f32 %v387_v14, %v387_v14 }
 0x4ca   :  { %v393_v16 = vsel %vm45_vm1, %v389_v15, 0.0  ;;  %v1161_v15 = vld [vmem:[%s1453_s2 + $0x38] sm:$0xff]  }
 0x4cb   :  { %394 = vadd.xlane.f32.xlu0 %v393_v16  ;;  %v1162_v16 = vld [vmem:[%s1453_s2 + $0x30] sm:$0xff]  }
 0x550   :  { %v392_v19 = vpop.xlane.xlu0 %391 }
 0x551   :  { %v396_v20 = vmul.f32 0.03125, %v392_v19 }
 0x553   :  { %v398_v21 = vadd.f32 1e-05, %v396_v20 }
 0x554   :  { %v395_v22 = vpop.xlane.xlu0 %394 }
 0x555   :  { %1179 = vrsqrt.f32 %v398_v21  ;;  %v397_v23 = vmul.f32 0.03125, %v395_v22  ;;  %v596_v22 = vsub.s32 4, %v1336_v26 }
 0x557   :  { %v399_v24 = vadd.f32 1e-05, %v397_v23  ;;  %v602_v23 = vsub.s32 5, %v1336_v26 }
 0x559   :  { %1181 = vrsqrt.f32 %v399_v24  ;;  %v597_v24 = vrot.slane %v1342_v28, %v596_v22 }
 0x562   :  { %v1180_v29 = vpop.eup %1179 }
 0x563   :  { %v402_v30 = vmul.f32 %v1180_v29, %v386_v10  ;;  %v603_v29 = vrot.slane %v1342_v28, %v602_v23 }
 0x565   :  { %v408_v35 = vmul.f32 %v407_v31, %v402_v30 }
 0x566   :  { %v1182_v33 = vpop.eup %1181 }
 0x567   :  { %v403_v34 = vmul.f32 %v1182_v33, %v387_v14  ;;  %v414_v38 = vadd.f32 %v413_v36, %v408_v35 }
 0x569   :  { %v409_v37 = vmul.f32 %v407_v31, %v403_v34 }
 0x56b   :  { %v415_v39 = vadd.f32 %v413_v36, %v409_v37 }
 0x56d   :  { %v421_v40 = vpack.c.bf16 %v415_v39, %v414_v38 }
 0x56f   :  { %1096 = vmatmul.mubr.msk.bf16.vlgmr.msra.gmra.mxu0 %vm45_vm1, %v421_v40 }
 0x570   :  { %1115 = vmatprep.mubr.msk.bf16.mxu0 %vm1210_vm0, %v1209_v1  ;;  %1112 = vmatpush3.bf16.msra.mxu0 %v1161_v15  ;;  %v623_v15 = vld [vmem:[%s1452_s1] sm:$0x1] }
 0x571   :  { %1113 = vmatprep.subr.bf16.mxu0 %v1209_v1 }
 0x574   :  { %1114 = vmatpush3.bf16.msra.mxu0 %v1162_v16  ;;  %v624_v16 = vld [vmem:[%s1452_s1 + $0x1] sm:$0x1] }
 0x575   :  { %1119 = vmatprep.subr.bf16.mxu0 %v1209_v1 }
 0x62f   :  { %v475_v46 = vpop.f32.mrf.mxu0 }
 0x630   :  { %v476_v48 = vadd.f32 %v475_v46, %v425_v45 }
 0x631   :  { %v1097_v47 = vpop.f32.mrf.mxu0 }
 0x632   :  { %v482_v52 = vmax.f32 %v476_v48, 0.0 }
 0x633   :  { %v478_v49 = vpop.f32.mrf.mxu0 }
 0x634   :  { %v479_v50 = vadd.f32 %v478_v49, %v425_v45 }
 0x635   :  { %v1098_v51 = vpop.f32.mrf.mxu0 }
 0x636   :  { %v483_v53 = vmax.f32 %v479_v50, 0.0 }
 0x638   :  { %v492_v54 = vpack.c.bf16 %v483_v53, %v482_v52 }
 0x63a   :  { %1108 = vmatmul.mubr.msk.bf16.vlgmr.msra.gmra.mxu1 %vm521_vm4, %v492_v54 }
 0x63b   :  { %1139 = vmatprep.mubr.msk.bf16.mxu1 %vm1210_vm0, %v1209_v1 }
 0x6fa   :  { %v559_v57 = vpop.f32.mrf.mxu1 }
 0x6fb   :  { %v560_v58 = vadd.f32 %v559_v57, %v496_v56 }
 0x6fc   :  { %v1109_v59 = vpop.f32.mrf.mxu1 }
 0x6fd   :  { %v566_v60 = vadd.f32 %v560_v58, %v414_v38 }
 0x6fe   :  { %v562_v61 = vpop.f32.mrf.mxu1 }
 0x6ff   :  { %v563_v62 = vadd.f32 %v562_v61, %v496_v56  ;;  %v568_v63 = vsel %vm45_vm1, %v566_v60, 0.0 }
 0x700   :  { %569 = vadd.xlane.f32.xlu0 %v568_v63  ;;  %v1110_v0 = vpop.f32.mrf.mxu1  ;;  %v1165_v63 = vld [vmem:[%s1454_s3 + $0x28] sm:$0xff]  }
 0x701   :  { %v567_v2 = vadd.f32 %v563_v62, %v415_v39  ;;  %v1164_v62 = vld [vmem:[%s1454_s3 + $0x30] sm:$0xff]   ;;  %v1166_v0 = vld [vmem:[%s1454_s3 + $0x20] sm:$0xff]  }
 0x703   :  { %v571_v5 = vsel %vm45_vm1, %v567_v2, 0.0 }
 0x704   :  { %572 = vadd.xlane.f32.xlu1 %v571_v5  ;;  %v1168_v5 = vld [vmem:[%s1454_s3 + $0x50] sm:$0xff]  }
 0x789   :  { %v570_v6 = vpop.xlane.xlu0 %569 }
 0x78a   :  { %v574_v7 = vmul.f32 0.03125, %v570_v6  ;;  %v1213_v6 = vmov 1966171168  }
 0x78c   :  { %v576_v8 = vsub.f32 %v566_v60, %v574_v7  ;;  %v1163_v60 = vld [vmem:[%s1454_s3 + $0x38] sm:$0xff]   ;;  %v638_v7 = vunpack.c.l.s4 %v1213_v6 }
 0x78d   :  { %v573_v9 = vpop.xlane.xlu1 %572 }
 0x78e   :  { %v575_v10 = vmul.f32 0.03125, %v573_v9  ;;  %v578_v11 = vmul.f32 %v576_v8, %v576_v8  ;;  %v622_v9 = vld [vmem:[%s1456_s5] sm:$0xff] }
 0x790   :  { %v577_v12 = vsub.f32 %v567_v2, %v575_v10  ;;  %v580_v13 = vsel %vm45_vm1, %v578_v11, 0.0  ;;  %v1167_v2 = vld [vmem:[%s1454_s3 + $0x58] sm:$0xff]   ;;  %v635_v10 = vrot.slane %v622_v9, %v406_v27  ;;  %v746_v27 = vrot.slane %v622_v9, %v412_v32  ;;  %v1170_v32 = vld [vmem:[%s1454_s3 + $0x40] sm:$0xff]  }
 0x791   :  { %581 = vadd.xlane.f32.xlu0 %v580_v13  ;;  %1132 = vmatpush3.bf16.msra.mxu1 %v1167_v2 }
 0x792   :  { %v579_v14 = vmul.f32 %v577_v12, %v577_v12  ;;  %1133 = vmatprep.subr.bf16.mxu1 %v1209_v1 }
 0x794   :  { %v583_v3 = vsel %vm45_vm1, %v579_v14, 0.0 }
 0x795   :  { %584 = vadd.xlane.f32.xlu1 %v583_v3  ;;  %1134 = vmatpush3.bf16.msra.mxu1 %v1168_v5 }
 0x796   :  { %1135 = vmatprep.subr.bf16.mxu1 %v1209_v1 }
 0x81a   :  { %v582_v4 = vpop.xlane.xlu0 %581 }
 0x81b   :  { %v586_v17 = vmul.f32 0.03125, %v582_v4 }
 0x81d   :  { %v588_v18 = vadd.f32 1e-05, %v586_v17 }
 0x81e   :  { %v585_v19 = vpop.xlane.xlu1 %584 }
 0x81f   :  { %1183 = vrsqrt.f32 %v588_v18  ;;  %v587_v20 = vmul.f32 0.03125, %v585_v19 }
 0x821   :  { %v589_v21 = vadd.f32 1e-05, %v587_v20 }
 0x823   :  { %1185 = vrsqrt.f32 %v589_v21 }
 0x82c   :  { %v1184_v25 = vpop.eup %1183 }
 0x82d   :  { %v592_v30 = vmul.f32 %v1184_v25, %v576_v8  ;;  %v639_v8 = vunpack.c.0.s8 %v638_v7 }
 0x82f   :  { %v598_v31 = vmul.f32 %v597_v24, %v592_v30  ;;  %v642_v11 = vsub.s32 %v639_v8, %v1336_v26 }
 0x830   :  { %v1186_v33 = vpop.eup %1185 }
 0x831   :  { %v604_v34 = vadd.f32 %v603_v29, %v598_v31  ;;  %v593_v35 = vmul.f32 %v1186_v33, %v577_v12  ;;  %v643_v12 = vrot.slane %v635_v10, %v642_v11  ;;  %v1169_v33 = vld [vmem:[%s1454_s3 + $0x48] sm:$0xff]   ;;  %s944_s3 = sshll.u32 %s1214_s20, 4  ;;  %s945_s3 = int_to_ptr.vmem [resolvable:$true] %s944_s3 }
 0x832   :  { %1136 = vmatpush3.bf16.msra.mxu1 %v1169_v33  ;;  %s1187_s21 = scalar_lea.vmem %s945_s3, 32  ;;  %p1192_p1 = scmp.lt.s32.totalorder %s945_s3, %s945_s3 }
 0x833   :  { %v606_v36 = vsel %vm45_vm1, %v604_v34, 0.0  ;;  %v599_v37 = vmul.f32 %v597_v24, %v593_v35  ;;  %v644_v13 = vcombine.high %v643_v12, %v643_v12  ;;  %v651_v14 = vrot.slane %v643_v12, %v642_v11  ;;  %1137 = vmatprep.subr.bf16.mxu1 %v1209_v1  ;;  %p1188_p0 = scmp.ne.s32.totalorder %s945_s3, %s1187_s21  ;;  %p1193_p2 = scmp.lt.s32.totalorder %s1187_s21, %s1187_s21 }
 0x834   :  { %v607_v38 = vrot.slane %v606_v36, 4  ;;  %v762_v34 = vrot.slane %v622_v9, %v424_v44 }
 0x835   :  { %v605_v39 = vadd.f32 %v603_v29, %v599_v37  ;;  %v658_v3 = vrot.slane %v644_v13, %v642_v11  ;;  %v661_v4 = vmul.f32 %v651_v14, %v623_v15  ;;  %p1194_p3 = por %p1193_p2, %p1192_p1 }
 0x836   :  { %v608_v40 = vadd.f32 %v607_v38, %v606_v36  ;;  %1138 = vmatpush3.bf16.msra.mxu1 %v1170_v32 }
 0x837   :  { %v613_v41 = vsel %vm45_vm1, %v605_v39, 0.0  ;;  %v662_v17 = vmul.f32 %v658_v3, %v624_v16  ;;  %p1195_p4 = pnand %p1194_p3, %p1188_p0 }
 0x838   :  { %v614_v42 = vrot.slane %v613_v41, 4  ;;  %v609_v43 = vrot.slane %v608_v40, 2 }
 0x839   :  { %v684_v18 = vcombine.low %v661_v4, %v662_v17 }
 0x83a   :  { %v615_v45 = vadd.f32 %v614_v42, %v613_v41  ;;  %v610_v46 = vadd.f32 %v609_v43, %v608_v40 }
 0x83b   :  { %v691_v19 = vrot.slane %v684_v18, %v642_v11 }
 0x83c   :  { %v611_v47 = vrot.slane %v610_v46, 1  ;;  %v616_v48 = vrot.slane %v615_v45, 2 }
 0x83d   :  { %v698_v20 = vrot.slane %v691_v19, %v642_v11 }
 0x83e   :  { %v612_v28 = vadd.f32 %v611_v47, %v610_v46  ;;  %v617_v49 = vadd.f32 %v616_v48, %v615_v45 }
 0x840   :  { %v618_v50 = vrot.slane %v617_v49, 1  ;;  %v620_v51 = vmul.f32 0.125, %v612_v28 }
 0x842   :  { %v619_v52 = vadd.f32 %v618_v50, %v617_v49  ;;  %v630_v54 = vpack.c.bf16 %v620_v51, %v620_v51 }
 0x844   :  { %v621_v53 = vmul.f32 0.125, %v619_v52  ;;  %v665_v57 = vunpack.c.l.b16 %v630_v54 }
 0x846   :  { %v631_v56 = vpack.c.bf16 %v621_v53, %v621_v53 }
 0x848   :  { %v666_v58 = vunpack.c.l.b16 %v631_v56 }
 0x84a   :  { %v668_v59 = vsel %vm667_vm5, %v666_v58, %v665_v57 }
 0x84b   :  { %v669_v61 = vpack.c.b16 %v668_v59, %v668_v59 }
 0x84d   :  { %1116 = vmatmul.mubr.msk.bf16.vlgmr.msra.gmra.mxu0 %vm45_vm1, %v669_v61 }
 0x84e   :  { %1120 = vmatpush3.bf16.msra.mxu0 %v1163_v60  ;;  %1127 = vmatprep.mubr.msk.bf16.mxu0 %vm1210_vm0, %v1209_v1 }
 0x84f   :  { %1121 = vmatprep.subr.bf16.mxu0 %v1209_v1 }
 0x852   :  { %1122 = vmatpush3.bf16.msra.mxu0 %v1164_v62 }
 0x853   :  { %1123 = vmatprep.subr.bf16.mxu0 %v1209_v1 }
 0x856   :  { %1124 = vmatpush3.bf16.msra.mxu0 %v1165_v63 }
 0x857   :  { %1125 = vmatprep.subr.bf16.mxu0 %v1209_v1  ;;  %v844_v1 = vrot.slane %v622_v9, %v495_v55 }
 0x85a   :  { %1126 = vmatpush3.bf16.msra.mxu0 %v1166_v0 }
 0x90d   :  { %v737_v21 = vpop.f32.mrf.mxu0 }
 0x90e   :  { %v738_v22 = vadd.f32 %v737_v21, %v698_v20 }
 0x90f   :  { %v1117_v23 = vpop.f32.mrf.mxu0 }
 0x910   :  { %v747_v24 = vadd.f32 %v746_v27, %v738_v22 }
 0x911   :  { %v740_v25 = vpop.f32.mrf.mxu0 }
 0x912   :  { %v748_v29 = vmax.f32 %v747_v24, 0.0 }
 0x913   :  { %v1118_v30 = vpop.f32.mrf.mxu0 }
 0x914   :  { %v758_v31 = vpack.c.bf16 %v748_v29, %v748_v29 }
 0x916   :  { %1128 = vmatmul.mubr.msk.bf16.vlgmr.msra.gmra.mxu0 %vm521_vm4, %v758_v31 }
 0x9d6   :  { %v824_v35 = vpop.f32.mrf.mxu0 }
 0x9d7   :  { %v825_v36 = vadd.f32 %v824_v35, %v762_v34 }
 0x9d8   :  { %v1129_v37 = vpop.f32.mrf.mxu0 }
 0x9d9   :  { %v830_v38 = vmax.f32 %v825_v36, 0.0 }
 0x9da   :  { %v827_v39 = vpop.f32.mrf.mxu0 }
 0x9db   :  { %v840_v40 = vpack.c.bf16 %v830_v38, %v830_v38 }
 0x9dc   :  { %v1130_v41 = vpop.f32.mrf.mxu0 }
 0x9dd   :  { %1140 = vmatmul.mubr.msk.bf16.vlgmr.msra.gmra.mxu1 %vm521_vm4, %v840_v40 }
 0xa9d   :  { %v906_v42 = vpop.f32.mrf.mxu1 }
 0xa9e   :  { %v907_v43 = vadd.f32 %v906_v42, %v844_v1 }
 0xa9f   :  { %v1141_v45 = vpop.f32.mrf.mxu1 }
 0xaa0   :  { %v919_v46 = vrot.slane %v907_v43, %v642_v11 }
 0xaa1   :  { %v909_v47 = vpop.f32.mrf.mxu1 }
 0xaa2   :  { %v920_v44 = vcombine.high %v919_v46, %v919_v46  ;;  %1014 = vst.sshfl [vmem:[#allocation2] sm:$0x1 pattern:$0x73625140] %v919_v46 }
 0xaa3   :  { %v1142_v48 = vpop.f32.mrf.mxu1 }
 0xaa4   :  { %1015 = vst.sshfl [vmem:[#allocation2 + $0x1] sm:$0x1 pattern:$0x73625140] %v920_v44 }
 0xaa5   :  { %1198 = shalt.err (!%p1195_p4)
}
 0xaa6   :  { %s1215_s22 = smov 16   ;;  %s1216_s23 = smov 1  }
 0xaa7   :  { %950 = dma.vmem_to_hbm [thread:$0]  %s945_s3, 32, %s1457_s6, [#allocation3], %s1215_s22, %s1215_s22, %s1216_s23  }
 0xaa8   :  { %1207 = dma.done.wait [#allocation3], 32  }
 0xaa9   :  { %1208 = vsyncadd [#allocation3], 4294967264 }
 0xaaa   :  { %954 = vsyncpa [#allocation3], 1 }

</bundles_post_ra>
